<compile_context>
chip_gen: v7x
topology: tpu7x:2x2x1
jax: 0.10.0
libtpu: 0.0.40
codegen_flags: <defaults>
</compile_context>

<pallas_src>
import jax
import jax.numpy as jnp
from jax import lax
from jax.experimental import pallas as pl
from jax.experimental.pallas import tpu as pltpu


def _matmul_prelu_kernel(alpha_ref, p_ref, w_ref, o_ref):
    # p_ref: (TM, K)  bf16 im2col patches      (K = 9 * Cin)
    # w_ref: (K, TC)  bf16 folded conv weights
    # o_ref: (TM, TC) f32  conv output (pre pixel-shuffle), PReLU fused
    acc = jnp.dot(p_ref[...], w_ref[...], preferred_element_type=jnp.float32)
    alpha = alpha_ref[0]                       # single shared PReLU parameter
    o_ref[...] = jnp.where(acc > 0, acc, alpha * acc).astype(o_ref.dtype)


def _pick_cout_tile(cout):
    for tc in (512, 256, 128):
        if cout % tc == 0:
            return tc
    return cout  # small Cout (demo): one full-width tile (allowed by BlockSpec)


def conv3x3_prelu_im2col(x_nchw, w_oihw, alpha, *, compute_dtype=jnp.bfloat16):
    """3x3 'same' conv (no bias) + PReLU. NCHW input -> (N, H, W, Cout) output."""
    N, Cin, H, W = x_nchw.shape
    Cout = w_oihw.shape[0]
    K = 9 * Cin
    M = N * H * W

    # ---- wrapper glue (transpose + pad + im2col; fused by XLA) -------------
    x_nhwc = jnp.transpose(x_nchw, (0, 2, 3, 1)).astype(compute_dtype)
    x_pad = jnp.pad(x_nhwc, ((0, 0), (1, 1), (1, 1), (0, 0)))
    # K ordering = (dy, dx, cin)
    patches = jnp.concatenate(
        [x_pad[:, dy:dy + H, dx:dx + W, :] for dy in range(3) for dx in range(3)],
        axis=-1).reshape(M, K)
    # weight (Cout, Cin, 3, 3) -> (dy, dx, cin, cout) -> (K, Cout)
    w_k = jnp.transpose(w_oihw, (2, 3, 1, 0)).reshape(K, Cout).astype(compute_dtype)

    # ---- tiling -------------------------------------------------------------
    TM = min(256, max(8, -(-M // 8) * 8))       # rows of im2col matrix per step
    M_pad = -(-M // TM) * TM
    if M_pad != M:
        patches = jnp.pad(patches, ((0, M_pad - M), (0, 0)))
    TC = _pick_cout_tile(Cout)                  # output-channel tile

    grid_spec = pltpu.PrefetchScalarGridSpec(
        num_scalar_prefetch=0,
        grid=(M_pad // TM, Cout // TC),
        in_specs=[
            pl.BlockSpec(memory_space=pltpu.MemorySpace.SMEM),   # alpha (scalar)
            pl.BlockSpec((TM, K), lambda m, c: (m, 0)),          # patches
            pl.BlockSpec((K, TC), lambda m, c: (0, c)),          # weights
        ],
        out_specs=pl.BlockSpec((TM, TC), lambda m, c: (m, c)),
    )

    y = pl.pallas_call(
        _matmul_prelu_kernel,
        out_shape=jax.ShapeDtypeStruct((M_pad, Cout), jnp.float32),
        grid_spec=grid_spec,
        compiler_params=pltpu.CompilerParams(
            dimension_semantics=("parallel", "parallel"),
            vmem_limit_bytes=32 * 1024 * 1024,
        ),
    )(alpha, patches, w_k)

    return y[:M].reshape(N, H, W, Cout)


def pixel_shuffle_nhwc_to_nchw(y_nhwc, r):
    """PixelShuffle (PyTorch channel ordering) + NHWC->NCHW in one transpose."""
    N, H, W, Crr = y_nhwc.shape
    C = Crr // (r * r)
    y = y_nhwc.reshape(N, H, W, C, r, r)
    # out[n, c, h*r+i, w*r+j] = y[n, h, w, c, i, j]
    y = jnp.transpose(y, (0, 3, 1, 4, 2, 5))
    return y.reshape(N, C, H * r, W * r)


def upsampling_block(x_nchw, w_oihw, alpha, upscale_factor):
    """Forward pass of SRGAN upsampling_block. NCHW in / NCHW out (PyTorch)."""
    y_nhwc = conv3x3_prelu_im2col(x_nchw, w_oihw, alpha)
    return pixel_shuffle_nhwc_to_nchw(y_nhwc, upscale_factor)


def _reference(x_nchw, w_oihw, alpha, r, compute_dtype=jnp.bfloat16):
    # Reference rounds operands to bf16 (same as the kernel) and accumulates in f32.
    xq = x_nchw.astype(compute_dtype).astype(jnp.float32)
    wq = w_oihw.astype(compute_dtype).astype(jnp.float32)
    conv = lax.conv_general_dilated(
        xq, wq, window_strides=(1, 1), padding="SAME",
        dimension_numbers=("NCHW", "OIHW", "NCHW"))
    N, Crr, H, W = conv.shape
    C = Crr // (r * r)
    ps = conv.reshape(N, C, r, r, H, W)
    ps = jnp.transpose(ps, (0, 1, 4, 2, 5, 3)).reshape(N, C, H * r, W * r)
    return jnp.where(ps > 0, ps, alpha[0] * ps)


if __name__ == "__main__":
    N, Cin, H, W = 2, 4, 16, 16
    r = 2
    Cout = Cin * r * r

    key = jax.random.PRNGKey(0)
    kx, kw = jax.random.split(key)
    x = jax.random.normal(kx, (N, Cin, H, W), dtype=jnp.float32)
    # Conv2d weight, PyTorch layout (Cout, Cin, kH, kW).
    w = jax.random.normal(kw, (Cout, Cin, 3, 3), dtype=jnp.float32) * 0.1
    # PReLU default: single shared parameter initialized to 0.25.
    alpha = jnp.array([0.25], dtype=jnp.float32)

    out = jax.block_until_ready(upsampling_block(x, w, alpha, r))
    ref = _reference(x, w, alpha, r)

    assert out.shape == (N, Cin, H * r, W * r)
    assert jnp.allclose(out, ref, atol=1e-3, rtol=1e-3), \
        float(jnp.max(jnp.abs(out - ref)))

    print("KERNEL_OK")
</pallas_src>

<mosaic_0001>
module attributes {stable_mosaic.version = 11 : i64} {
  func.func @_matmul_prelu_kernel(%arg0: i32, %arg1: i32, %arg2: memref<1xf32, #tpu.memory_space<smem>>, %arg3: memref<256x36xbf16, #tpu.memory_space<vmem>>, %arg4: memref<36x16xbf16, #tpu.memory_space<vmem>>, %arg5: memref<256x16xf32, #tpu.memory_space<vmem>>) attributes {dimension_semantics = [#tpu.dimension_semantics<parallel>, #tpu.dimension_semantics<parallel>], iteration_bounds = array<i64: 2, 1>, scalar_prefetch = 0 : i64, scratch_operands = 0 : i64, tpu.core_type = #tpu.core_type<tc>, window_params = [{transform_indices = @transform_0, window_bounds = array<i64: 1>}, {transform_indices = @transform_1, window_bounds = array<i64: 256, 36>}, {transform_indices = @transform_2, window_bounds = array<i64: 36, 16>}, {transform_indices = @transform_3, window_bounds = array<i64: 256, 16>}]} {
    %c0 = arith.constant 0 : index
    %c0_0 = arith.constant 0 : index
    %0 = vector.load %arg3[%c0, %c0_0] : memref<256x36xbf16, #tpu.memory_space<vmem>>, vector<256x36xbf16>
    %c0_1 = arith.constant 0 : index
    %c0_2 = arith.constant 0 : index
    %1 = vector.load %arg4[%c0_1, %c0_2] : memref<36x16xbf16, #tpu.memory_space<vmem>>, vector<36x16xbf16>
    %cst = arith.constant dense<0.000000e+00> : vector<256x16xf32>
    %2 = tpu.matmul %0, %1, %cst {dimension_numbers = #tpu.dot_dimension_numbers<[1], [0], [0], [1], [0, 0, 1, 1], [], []>} : vector<256x36xbf16>, vector<36x16xbf16>, vector<256x16xf32> -> vector<256x16xf32>
    %c0_3 = arith.constant 0 : index
    %3 = memref.load %arg2[%c0_3] : memref<1xf32, #tpu.memory_space<smem>>
    %cst_4 = arith.constant 0.000000e+00 : f32
    %4 = vector.broadcast %cst_4 : f32 to vector<256x16xf32>
    %5 = arith.cmpf ogt, %2, %4 : vector<256x16xf32>
    %6 = vector.broadcast %3 : f32 to vector<256x16xf32>
    %7 = arith.mulf %6, %2 : vector<256x16xf32>
    %8 = arith.select %5, %2, %7 : vector<256x16xi1>, vector<256x16xf32>
    %c0_5 = arith.constant 0 : index
    %c0_6 = arith.constant 0 : index
    %9 = vector.load %arg5[%c0_5, %c0_6] : memref<256x16xf32, #tpu.memory_space<vmem>>, vector<256x16xf32>
    tpu.vector_store %arg5[%c0_5, %c0_6], %8 {strides = array<i32>} : memref<256x16xf32, #tpu.memory_space<vmem>>, vector<256x16xf32>,
    return
  }
  func.func @transform_0(%arg0: i32, %arg1: i32) -> i32 {
    %c0_i32 = arith.constant 0 : i32
    %c0_i32_0 = arith.constant 0 : i32
    return %c0_i32 : i32
  }
  func.func @transform_1(%arg0: i32, %arg1: i32) -> (i32, i32) {
    %c0_i32 = arith.constant 0 : i32
    %c0_i32_0 = arith.constant 0 : i32
    return %arg0, %c0_i32 : i32, i32
  }
  func.func @transform_2(%arg0: i32, %arg1: i32) -> (i32, i32) {
    %c0_i32 = arith.constant 0 : i32
    %c0_i32_0 = arith.constant 0 : i32
    return %c0_i32, %arg1 : i32, i32
  }
  func.func @transform_3(%arg0: i32, %arg1: i32) -> (i32, i32) {
    %c0_i32 = arith.constant 0 : i32
    return %arg0, %arg1 : i32, i32
  }
}

</mosaic_0001>

<bundles_post_ra>
// kernel: tpu_custom_call.1
= control target key start
LH: loop header
LB: loop body
LE: loop exit
PB: predicated region body
PF: predicated region fallthrough
CT: control target
= control target key end

     0   :  { %s982_s14 = smov 0   ;;  %s984_s15 = smov 0   ;;  %s1162_s0 = inlined_call_operand.<no memory space> [shape: f32[1], index: 0, kind: input, shape index: {}]   ;;  %s1163_s1 = inlined_call_operand.vmem [shape: bf16[512,36], index: 1, kind: input, shape index: {}]   ;;  %s1164_s2 = inlined_call_operand.vmem [shape: bf16[36,16], index: 2, kind: input, shape index: {}]   ;;  %s1165_s3 = inlined_call_operand.vmem [shape: f32[512,16], index: 3, kind: output, shape index: {}]  }
   0x1   :  { %8 = sst [smem:[#allocation2]] %s1162_s0  ;;  %s986_s16 = smov 0  }
   0x2 LB: > { %s26_s0 = sadd.s32 1, %s953_s15  ;;  %p785_p0 = scmp.ge.s32.totalorder %s957_s16, 1  ;;  %s957_s16 = sphi %s986_s16, %s14_s16   ;;  %s953_s15 = sphi %s984_s15, %s1167_s15   ;;  %s949_s14 = sphi %s982_s14, %s1166_s14  }
   0x3   : > { %p28_p1 = scmp.ge.s32.totalorder %s26_s0, 2  ;;  %p162_p2 = scmp.lt.s32.totalorder %s957_s16, 3 }
   0x5   : > { %s1169_s0 = smov (%p28_p1, %s26_s0), 0  ;;  %p163_p3 = pnand %p785_p0, %p162_p2 }
   0x6   : > { %v916_v0 = vld [vmem:[%s1164_s2] sm:$0xff] (!%p163_p3)   ;;  %v917_v1 = vld [vmem:[%s1164_s2 + $0x8] sm:$0xff] (!%p163_p3)   ;;  %s786_s21 = sshll.u32 (!%p163_p3), %s949_s14, 5  ;;  %v918_v2 = vld [vmem:[%s1164_s2 + $0x10] ss:$0 sps:$4 sm:$0x33] (!%p163_p3)  }
   0x7   : > { %166 = sbr.rel (%p163_p3) target bundleno = 264 (0x108), region = 32  ;;  %846 = vmatprep.subr.bf16.mxu0 (!%p163_p3), %v916_v0  ;;  %884 = vmatprep.subr.bf16.mxu1 (!%p163_p3), %v916_v0  ;;  %p194_p4 = scmp.lt.s32.totalorder (!%p163_p3), %s786_s21, 63  ;;  %vm394_vm0 = vcmask (!%p163_p3), 1041408   ;;  %vm345_vm1 = vcmask (!%p163_p3), 293888   ;;  %vm657_vm2 = vcmask (!%p163_p3), 130048  }
   0x8   : > { %847 = vmatpush3.bf16.msra.mxu0 (!%p163_p3), %v916_v0  ;;  %887 = vmatpush3.bf16.msra.mxu1 (!%p163_p3), %v916_v0  ;;  %v396_v3 = vsel (!%p163_p3), %vm394_vm0, %v918_v2, 0  ;;  %s559_s28 = sld [smem:[#allocation2]] (!%p163_p3) }
   0x9   : > { %848 = vmatprep.subr.bf16.mxu0 (!%p163_p3), %v917_v1  ;;  %885 = vmatprep.subr.bf16.mxu1 (!%p163_p3), %v917_v1 }
   0xc   : > { %849 = vmatpush3.bf16.msra.mxu0 (!%p163_p3), %v917_v1  ;;  %888 = vmatpush3.bf16.msra.mxu1 (!%p163_p3), %v917_v1 }
   0xd   : > { %890 = vmatprep.subr.msk.bf16.mxu0 (!%p163_p3), %vm394_vm0, %v918_v2  ;;  %891 = vmatprep.subr.msk.bf16.mxu1 (!%p163_p3), %vm394_vm0, %v918_v2 }
   0xe   : > { %s1171_s21 = smov (!%p194_p4, %s786_s21), 63  ;;  %v1050_v20 = vstv %s559_s28 }
   0xf   : > { %s787_s24 = sshll.u32 %s1171_s21, 2  ;;  %s789_s29 = sshll.u32 %s1171_s21, 3 }
  0x10   : > { %s1015_s27 = scalar_lea.vmem %s1163_s1, %s787_s24  ;;  %851 = vmatpush3.bf16.msra.mxu0 %v396_v3  ;;  %889 = vmatpush3.bf16.msra.mxu1 %v396_v3  ;;  %s1055_s5 = scalar_lea.vmem %s1165_s3, %s789_s29 }
  0x11   : > { %v919_v4 = vld [vmem:[%s1015_s27] sm:$0xff]   ;;  %v921_v6 = vld [vmem:[%s1015_s27 + $0x8] sm:$0xff]   ;;  %v923_v8 = vld [vmem:[%s1015_s27 + $0x10] sm:$0xff]  }
  0x12   : > { %v920_v5 = vld [vmem:[%s1015_s27 + $0x40] sm:$0xff]   ;;  %852 = vmatprep.mubr.msk.bf16.mxu0 %vm345_vm1, %v919_v4  ;;  %v922_v7 = vld [vmem:[%s1015_s27 + $0x48] sm:$0xff]   ;;  %v924_v9 = vld [vmem:[%s1015_s27 + $0x50] sm:$0xff]  }
  0x13   : > { %868 = vmatprep.mubr.msk.bf16.mxu1 %vm345_vm1, %v920_v5  ;;  %853 = vmatmul.mubr.msk.bf16.vlgmr.msra.gmra.mrb[0].mxu0 %vm345_vm1, %v921_v6  ;;  %v925_v10 = vld [vmem:[%s1015_s27 + $0x18] sm:$0xff]   ;;  %v927_v12 = vld [vmem:[%s1015_s27 + $0x20] sm:$0xff]   ;;  %v929_v14 = vld [vmem:[%s1015_s27 + $0x28] sm:$0xff]  }
  0x14   : > { %869 = vmatmul.mubr.msk.bf16.vlgmr.msra.gmra.mrb[0].mxu1 %vm345_vm1, %v922_v7  ;;  %856 = vmatprep.mubr.msk.bf16.mxu0 %vm345_vm1, %v923_v8  ;;  %v926_v11 = vld [vmem:[%s1015_s27 + $0x58] sm:$0xff]   ;;  %v928_v13 = vld [vmem:[%s1015_s27 + $0x60] sm:$0xff]   ;;  %v930_v15 = vld [vmem:[%s1015_s27 + $0x68] sm:$0xff]  }
  0x15   : > { %872 = vmatprep.mubr.msk.bf16.mxu1 %vm345_vm1, %v924_v9  ;;  %v931_v16 = vld [vmem:[%s1015_s27 + $0x30] sm:$0xff]   ;;  %v933_v18 = vld [vmem:[%s1015_s27 + $0x38] sm:$0xff]  }
  0x16   : > { %v932_v17 = vld [vmem:[%s1015_s27 + $0x70] sm:$0xff]   ;;  %v934_v19 = vld [vmem:[%s1015_s27 + $0x78] sm:$0xff]  }
  0x1b   : > { %857 = vmatmul.mubr.msk.bf16.gmra.mrb[4].mxu0 %vm345_vm1, %v925_v10 }
  0x1c   : > { %873 = vmatmul.mubr.msk.bf16.gmra.mrb[4].mxu1 %vm345_vm1, %v926_v11  ;;  %860 = vmatprep.mubr.msk.bf16.mxu0 %vm345_vm1, %v927_v12 }
  0x1d   : > { %876 = vmatprep.mubr.msk.bf16.mxu1 %vm345_vm1, %v928_v13 }
  0x23   : > { %861 = vmatmul.mubr.msk.bf16.gmra.mrb[8].mxu0 %vm345_vm1, %v929_v14 }
  0x24   : > { %877 = vmatmul.mubr.msk.bf16.gmra.mrb[8].mxu1 %vm345_vm1, %v930_v15  ;;  %864 = vmatprep.mubr.msk.bf16.mxu0 %vm345_vm1, %v931_v16 }
  0x25   : > { %880 = vmatprep.mubr.msk.bf16.mxu1 %vm345_vm1, %v932_v17 }
  0x2b   : > { %865 = vmatmul.mubr.msk.bf16.gmra.mrb[12].mxu0 %vm345_vm1, %v933_v18 }
  0x2c   : > { %881 = vmatmul.mubr.msk.bf16.gmra.mrb[12].mxu1 %vm345_vm1, %v934_v19 }
  0xe6   : > { %v854_v21 = vpop.f32.mrb[0].mxu0 }
  0xe7   : > { %v870_v22 = vpop.f32.mrb[0].mxu1  ;;  %vm562_vm3 = vcmp.gt.f32.partialorder %v854_v21, 0.0  ;;  %v595_v23 = vmul.f32 %v854_v21, %v1050_v20  ;;  %v432_v25 = vpop.f32.mrb[1].mxu0 }
  0xe8   : > { %vm578_vm4 = vcmp.gt.f32.partialorder %v870_v22, 0.0  ;;  %v611_v24 = vmul.f32 %v870_v22, %v1050_v20  ;;  %v496_v26 = vpop.f32.mrb[1].mxu1  ;;  %vm560_vm5 = vcmp.gt.f32.partialorder %v432_v25, 0.0  ;;  %v593_v27 = vmul.f32 %v1050_v20, %v432_v25  ;;  %v855_v29 = vpop.f32.mrb[2].mxu0 }
  0xe9   : > { %vm576_vm6 = vcmp.gt.f32.partialorder %v496_v26, 0.0  ;;  %v609_v28 = vmul.f32 %v1050_v20, %v496_v26  ;;  %v871_v30 = vpop.f32.mrb[2].mxu1  ;;  %v627_v31 = vsel %vm562_vm3, %v854_v21, %v595_v23  ;;  %vm563_vm7 = vcmp.gt.f32.partialorder %v855_v29, 0.0  ;;  %v435_v34 = vpop.f32.mrb[3].mxu0 }
  0xea   : > { %v643_v32 = vsel %vm578_vm4, %v870_v22, %v611_v24  ;;  %v596_v33 = vmul.f32 %v855_v29, %v1050_v20  ;;  %v499_v35 = vpop.f32.mrb[3].mxu1  ;;  %660 = vst.msk [vmem:[%s1055_s5 + $0x10] sm:$0xff] %vm657_vm2, %v627_v31  ;;  %v625_v36 = vsel %vm560_vm5, %v432_v25, %v593_v27  ;;  %vm579_vm8 = vcmp.gt.f32.partialorder %v871_v30, 0.0 }
  0xeb   : > { %676 = vst.msk [vmem:[%s1055_s5 + $0x90] sm:$0xff] %vm657_vm2, %v643_v32  ;;  %v641_v37 = vsel %vm576_vm6, %v496_v26, %v609_v28  ;;  %v612_v38 = vmul.f32 %v871_v30, %v1050_v20  ;;  %658 = vst.msk [vmem:[%s1055_s5] sm:$0xff] %vm657_vm2, %v625_v36  ;;  %vm561_vm9 = vcmp.gt.f32.partialorder %v435_v34, 0.0  ;;  %v594_v40 = vmul.f32 %v1050_v20, %v435_v34 }
  0xec   : > { %674 = vst.msk [vmem:[%s1055_s5 + $0x80] sm:$0xff] %vm657_vm2, %v641_v37  ;;  %v628_v39 = vsel %vm563_vm7, %v855_v29, %v596_v33  ;;  %vm577_vm10 = vcmp.gt.f32.partialorder %v499_v35, 0.0  ;;  %v610_v42 = vmul.f32 %v1050_v20, %v499_v35 }
  0xed   : > { %661 = vst.msk [vmem:[%s1055_s5 + $0x18] sm:$0xff] %vm657_vm2, %v628_v39  ;;  %v644_v41 = vsel %vm579_vm8, %v871_v30, %v612_v38  ;;  %v626_v43 = vsel %vm561_vm9, %v435_v34, %v594_v40 }
  0xee   : > { %677 = vst.msk [vmem:[%s1055_s5 + $0x98] sm:$0xff] %vm657_vm2, %v644_v41  ;;  %659 = vst.msk [vmem:[%s1055_s5 + $0x8] sm:$0xff] %vm657_vm2, %v626_v43  ;;  %v642_v44 = vsel %vm577_vm10, %v499_v35, %v610_v42  ;;  %v858_v45 = vpop.f32.mrb[4].mxu0 }
  0xef   : > { %v874_v46 = vpop.f32.mrb[4].mxu1  ;;  %675 = vst.msk [vmem:[%s1055_s5 + $0x88] sm:$0xff] %vm657_vm2, %v642_v44  ;;  %vm566_vm11 = vcmp.gt.f32.partialorder %v858_v45, 0.0  ;;  %v599_v47 = vmul.f32 %v858_v45, %v1050_v20  ;;  %v448_v49 = vpop.f32.mrb[5].mxu0 }
  0xf0   : > { %vm582_vm12 = vcmp.gt.f32.partialorder %v874_v46, 0.0  ;;  %v615_v48 = vmul.f32 %v874_v46, %v1050_v20  ;;  %v512_v50 = vpop.f32.mrb[5].mxu1  ;;  %vm564_vm13 = vcmp.gt.f32.partialorder %v448_v49, 0.0  ;;  %v597_v51 = vmul.f32 %v1050_v20, %v448_v49  ;;  %v859_v53 = vpop.f32.mrb[6].mxu0 }
  0xf1   : > { %vm580_vm14 = vcmp.gt.f32.partialorder %v512_v50, 0.0  ;;  %v613_v52 = vmul.f32 %v1050_v20, %v512_v50  ;;  %v875_v54 = vpop.f32.mrb[6].mxu1  ;;  %v631_v55 = vsel %vm566_vm11, %v858_v45, %v599_v47  ;;  %vm567_vm15 = vcmp.gt.f32.partialorder %v859_v53, 0.0  ;;  %v451_v58 = vpop.f32.mrb[7].mxu0 }
  0xf2   : > { %v647_v56 = vsel %vm582_vm12, %v874_v46, %v615_v48  ;;  %v600_v57 = vmul.f32 %v859_v53, %v1050_v20  ;;  %v515_v59 = vpop.f32.mrb[7].mxu1  ;;  %664 = vst.msk [vmem:[%s1055_s5 + $0x30] sm:$0xff] %vm657_vm2, %v631_v55  ;;  %v629_v60 = vsel %vm564_vm13, %v448_v49, %v597_v51  ;;  %vm583_vm0 = vcmp.gt.f32.partialorder %v875_v54, 0.0 }
  0xf3   : > { %680 = vst.msk [vmem:[%s1055_s5 + $0xb0] sm:$0xff] %vm657_vm2, %v647_v56  ;;  %v645_v61 = vsel %vm580_vm14, %v512_v50, %v613_v52  ;;  %v616_v62 = vmul.f32 %v875_v54, %v1050_v20  ;;  %662 = vst.msk [vmem:[%s1055_s5 + $0x20] sm:$0xff] %vm657_vm2, %v629_v60  ;;  %vm565_vm1 = vcmp.gt.f32.partialorder %v451_v58, 0.0  ;;  %v598_v0 = vmul.f32 %v1050_v20, %v451_v58 }
  0xf4   : > { %678 = vst.msk [vmem:[%s1055_s5 + $0xa0] sm:$0xff] %vm657_vm2, %v645_v61  ;;  %v632_v63 = vsel %vm567_vm15, %v859_v53, %v600_v57  ;;  %vm581_vm3 = vcmp.gt.f32.partialorder %v515_v59, 0.0  ;;  %v614_v2 = vmul.f32 %v1050_v20, %v515_v59 }
  0xf5   : > { %665 = vst.msk [vmem:[%s1055_s5 + $0x38] sm:$0xff] %vm657_vm2, %v632_v63  ;;  %v648_v1 = vsel %vm583_vm0, %v875_v54, %v616_v62  ;;  %v630_v3 = vsel %vm565_vm1, %v451_v58, %v598_v0 }
  0xf6   : > { %681 = vst.msk [vmem:[%s1055_s5 + $0xb8] sm:$0xff] %vm657_vm2, %v648_v1  ;;  %663 = vst.msk [vmem:[%s1055_s5 + $0x28] sm:$0xff] %vm657_vm2, %v630_v3  ;;  %v646_v4 = vsel %vm581_vm3, %v515_v59, %v614_v2  ;;  %v862_v5 = vpop.f32.mrb[8].mxu0 }
  0xf7   : > { %v878_v6 = vpop.f32.mrb[8].mxu1  ;;  %679 = vst.msk [vmem:[%s1055_s5 + $0xa8] sm:$0xff] %vm657_vm2, %v646_v4  ;;  %vm570_vm4 = vcmp.gt.f32.partialorder %v862_v5, 0.0  ;;  %v603_v7 = vmul.f32 %v862_v5, %v1050_v20  ;;  %v464_v9 = vpop.f32.mrb[9].mxu0 }
  0xf8   : > { %vm586_vm5 = vcmp.gt.f32.partialorder %v878_v6, 0.0  ;;  %v619_v8 = vmul.f32 %v878_v6, %v1050_v20  ;;  %v528_v10 = vpop.f32.mrb[9].mxu1  ;;  %vm568_vm6 = vcmp.gt.f32.partialorder %v464_v9, 0.0  ;;  %v601_v11 = vmul.f32 %v1050_v20, %v464_v9  ;;  %v863_v13 = vpop.f32.mrb[10].mxu0 }
  0xf9   : > { %vm584_vm7 = vcmp.gt.f32.partialorder %v528_v10, 0.0  ;;  %v617_v12 = vmul.f32 %v1050_v20, %v528_v10  ;;  %v879_v14 = vpop.f32.mrb[10].mxu1  ;;  %v635_v15 = vsel %vm570_vm4, %v862_v5, %v603_v7  ;;  %vm571_vm8 = vcmp.gt.f32.partialorder %v863_v13, 0.0  ;;  %v467_v18 = vpop.f32.mrb[11].mxu0 }
  0xfa   : > { %v651_v16 = vsel %vm586_vm5, %v878_v6, %v619_v8  ;;  %v604_v17 = vmul.f32 %v863_v13, %v1050_v20  ;;  %v531_v19 = vpop.f32.mrb[11].mxu1  ;;  %668 = vst.msk [vmem:[%s1055_s5 + $0x50] sm:$0xff] %vm657_vm2, %v635_v15  ;;  %v633_v21 = vsel %vm568_vm6, %v464_v9, %v601_v11  ;;  %vm587_vm9 = vcmp.gt.f32.partialorder %v879_v14, 0.0 }
  0xfb   : > { %684 = vst.msk [vmem:[%s1055_s5 + $0xd0] sm:$0xff] %vm657_vm2, %v651_v16  ;;  %v649_v22 = vsel %vm584_vm7, %v528_v10, %v617_v12  ;;  %v620_v23 = vmul.f32 %v879_v14, %v1050_v20  ;;  %666 = vst.msk [vmem:[%s1055_s5 + $0x40] sm:$0xff] %vm657_vm2, %v633_v21  ;;  %vm569_vm10 = vcmp.gt.f32.partialorder %v467_v18, 0.0  ;;  %v602_v25 = vmul.f32 %v1050_v20, %v467_v18 }
  0xfc   : > { %682 = vst.msk [vmem:[%s1055_s5 + $0xc0] sm:$0xff] %vm657_vm2, %v649_v22  ;;  %v636_v24 = vsel %vm571_vm8, %v863_v13, %v604_v17  ;;  %vm585_vm11 = vcmp.gt.f32.partialorder %v531_v19, 0.0  ;;  %v618_v27 = vmul.f32 %v1050_v20, %v531_v19 }
  0xfd   : > { %669 = vst.msk [vmem:[%s1055_s5 + $0x58] sm:$0xff] %vm657_vm2, %v636_v24  ;;  %v652_v26 = vsel %vm587_vm9, %v879_v14, %v620_v23  ;;  %v634_v28 = vsel %vm569_vm10, %v467_v18, %v602_v25 }
  0xfe   : > { %685 = vst.msk [vmem:[%s1055_s5 + $0xd8] sm:$0xff] %vm657_vm2, %v652_v26  ;;  %667 = vst.msk [vmem:[%s1055_s5 + $0x48] sm:$0xff] %vm657_vm2, %v634_v28  ;;  %v650_v29 = vsel %vm585_vm11, %v531_v19, %v618_v27  ;;  %v866_v30 = vpop.f32.mrb[12].mxu0 }
  0xff   : > { %v882_v31 = vpop.f32.mrb[12].mxu1  ;;  %683 = vst.msk [vmem:[%s1055_s5 + $0xc8] sm:$0xff] %vm657_vm2, %v650_v29  ;;  %vm574_vm12 = vcmp.gt.f32.partialorder %v866_v30, 0.0  ;;  %v607_v32 = vmul.f32 %v866_v30, %v1050_v20  ;;  %v480_v34 = vpop.f32.mrb[13].mxu0 }
 0x100   : > { %vm590_vm13 = vcmp.gt.f32.partialorder %v882_v31, 0.0  ;;  %v623_v33 = vmul.f32 %v882_v31, %v1050_v20  ;;  %v544_v35 = vpop.f32.mrb[13].mxu1  ;;  %vm572_vm14 = vcmp.gt.f32.partialorder %v480_v34, 0.0  ;;  %v605_v36 = vmul.f32 %v1050_v20, %v480_v34  ;;  %v867_v38 = vpop.f32.mrb[14].mxu0 }
 0x101   : > { %vm588_vm15 = vcmp.gt.f32.partialorder %v544_v35, 0.0  ;;  %v621_v37 = vmul.f32 %v1050_v20, %v544_v35  ;;  %v883_v39 = vpop.f32.mrb[14].mxu1  ;;  %v639_v40 = vsel %vm574_vm12, %v866_v30, %v607_v32  ;;  %vm575_vm0 = vcmp.gt.f32.partialorder %v867_v38, 0.0  ;;  %v483_v43 = vpop.f32.mrb[15].mxu0 }
 0x102   : > { %v655_v41 = vsel %vm590_vm13, %v882_v31, %v623_v33  ;;  %v608_v42 = vmul.f32 %v867_v38, %v1050_v20  ;;  %v547_v44 = vpop.f32.mrb[15].mxu1  ;;  %672 = vst.msk [vmem:[%s1055_s5 + $0x70] sm:$0xff] %vm657_vm2, %v639_v40  ;;  %v637_v45 = vsel %vm572_vm14, %v480_v34, %v605_v36  ;;  %vm591_vm1 = vcmp.gt.f32.partialorder %v883_v39, 0.0 }
 0x103   : > { %688 = vst.msk [vmem:[%s1055_s5 + $0xf0] sm:$0xff] %vm657_vm2, %v655_v41  ;;  %v653_v46 = vsel %vm588_vm15, %v544_v35, %v621_v37  ;;  %v624_v47 = vmul.f32 %v883_v39, %v1050_v20  ;;  %670 = vst.msk [vmem:[%s1055_s5 + $0x60] sm:$0xff] %vm657_vm2, %v637_v45  ;;  %vm573_vm3 = vcmp.gt.f32.partialorder %v483_v43, 0.0  ;;  %v606_v49 = vmul.f32 %v1050_v20, %v483_v43 }
 0x104   : > { %686 = vst.msk [vmem:[%s1055_s5 + $0xe0] sm:$0xff] %vm657_vm2, %v653_v46  ;;  %v640_v48 = vsel %vm575_vm0, %v867_v38, %v608_v42  ;;  %vm589_vm4 = vcmp.gt.f32.partialorder %v547_v44, 0.0  ;;  %v622_v51 = vmul.f32 %v1050_v20, %v547_v44 }
 0x105   : > { %673 = vst.msk [vmem:[%s1055_s5 + $0x78] sm:$0xff] %vm657_vm2, %v640_v48  ;;  %v656_v50 = vsel %vm591_vm1, %v883_v39, %v624_v47  ;;  %v638_v52 = vsel %vm573_vm3, %v483_v43, %v606_v49 }
 0x106   : > { %689 = vst.msk [vmem:[%s1055_s5 + $0xf8] sm:$0xff] %vm657_vm2, %v656_v50  ;;  %671 = vst.msk [vmem:[%s1055_s5 + $0x68] sm:$0xff] %vm657_vm2, %v638_v52  ;;  %v654_v53 = vsel %vm589_vm4, %v547_v44, %v622_v51 }
 0x107   : > { %687 = vst.msk [vmem:[%s1055_s5 + $0xe8] sm:$0xff] %vm657_vm2, %v654_v53 }
 0x108 PF: > { %s14_s16 = sadd.s32 1, %s957_s16   ;;  %s1166_s14 = smov %s953_s15 }
 0x109   : > { %p11_p5 = scmp.ge.s32.totalorder %s14_s16, 4   ;;  %s1167_s15 = smov %s1169_s0 }
 0x10b   :  { %13 = sbr.rel (!%p11_p5) target bundleno = 2 (0x2), region = 65 }

</bundles_post_ra>
